<compile_context>
chip_gen: v6e
topology: v6e:2x2x1
jax: 0.10.0
libtpu: 0.0.40
codegen_flags: <defaults>
</compile_context>

<pallas_src>
import jax
import jax.numpy as jnp
from jax.experimental import pallas as pl
from jax.experimental.pallas import tpu as pltpu

LANE = 128  # TPU lane width

# Conservative per-TensorCore VMEM budget: leaves headroom on v7x (64 MiB/TC)
# and is far under v5e/v6e's 128 MiB physical VMEM. Also used as the explicit
# scoped-VMEM limit (default scoped limit is only 16/32 MiB).
VMEM_LIMIT_BYTES = 48 * 1024 * 1024
_TILE_BUDGET_BYTES = int(VMEM_LIMIT_BYTES * 0.75)


def _pick_batch_tile(B, D_in, H1, out_cols):
    """Largest lane-aligned batch tile whose working set fits the VMEM budget."""
    if B <= 2 * LANE:
        return B  # single block; block dims == full array dims is always legal
    # Resident weights/biases (bf16 w1/w2, f32 biases); counted twice in case
    # the single-buffering request is unavailable and they get double-buffered.
    resident = 2 * (D_in * H1 * 2 + H1 * 4 + H1 * max(out_cols, 1) * 2 + out_cols * 4)
    # Per batch row: double-buffered bf16 x tile + f32 h intermediate
    # + double-buffered f32 output tile.
    per_row = 2 * (D_in * 2) + H1 * 4 + 2 * (out_cols * 4)
    avail = max(_TILE_BUDGET_BYTES - resident, per_row * LANE)
    tb = avail // per_row
    tb = min(tb, 4096)                       # diminishing returns past ~4K rows
    tb = min(tb, max(LANE, pl.cdiv(B, 2)))   # >= 2 grid steps -> both v7x TCs work
    return max(LANE, (tb // LANE) * LANE)


def _make_mlp_kernel(d_out):
    use_vpu_reduce = (d_out == 1)

    def mlp_kernel(x_ref, w1_ref, b1_ref, w2_ref, b2_ref, y_ref):
        # Layer 1 on the MXU: bf16 x bf16 -> f32 accumulation.
        h = jnp.dot(x_ref[...], w1_ref[...], preferred_element_type=jnp.float32)
        # Bias + ReLU epilogue in f32 on the VPU (v5e has no bf16 VALU path).
        h = jnp.maximum(h + b1_ref[...], 0.0)

        if use_vpu_reduce:
            # D_out == 1: a (H1, 1) RHS would waste an MXU pass on a 1-lane
            # result. VPU multiply + XLU cross-lane reduce instead; the MXU is
            # busy with layer 1 and the XLU slot is otherwise idle.
            y_col = jnp.sum(h * w2_ref[...], axis=-1, keepdims=True)      # (tb, 1)
            # XLU transpose -> lane-dense (1, tb) row: unmasked full-lane
            # stores and ~128x less output HBM traffic than a padded slab.
            y_row = y_col.T + b2_ref[0]                                   # (1, tb)
            y_ref[...] = y_row.reshape(y_ref.shape).astype(y_ref.dtype)
        else:
            # General D_out: second MXU matmul against lane-padded bf16 w2.
            y = jnp.dot(h.astype(jnp.bfloat16), w2_ref[...],
                        preferred_element_type=jnp.float32)
            y_ref[...] = (y + b2_ref[...]).astype(y_ref.dtype)

    return mlp_kernel


def two_layer_net(x, w1, b1, w2, b2, *, tb=None):
    """y = relu(x @ w1 + b1) @ w2 + b2, fused in one pallas_call."""
    B, D_in = x.shape
    H1, D_out = w2.shape
    assert w1.shape == (D_in, H1)
    out_dtype = x.dtype

    use_vpu_reduce = (D_out == 1)
    d_out_pad = pl.cdiv(D_out, LANE) * LANE  # lane-dense width (general path)

    if tb is None:
        tb = _pick_batch_tile(B, D_in, H1, 1 if use_vpu_reduce else d_out_pad)
    num_tiles = pl.cdiv(B, tb)  # ragged last block handled by Pallas (no jnp.pad)

    # MXU operands in bf16 (cast once here); biases / VPU-path weight stay f32.
    x_arg = x.astype(jnp.bfloat16)
    w1_arg = w1.astype(jnp.bfloat16)
    b1_arg = b1.reshape(1, H1).astype(jnp.float32)

    vmem = pltpu.MemorySpace.VMEM
    smem = pltpu.MemorySpace.SMEM

    if use_vpu_reduce:
        w2_arg = w2.reshape(1, H1).astype(jnp.float32)       # VPU path: keep f32
        b2_arg = b2.reshape(1).astype(jnp.float32)           # scalar via SMEM
        out_shape = jax.ShapeDtypeStruct((num_tiles, 1, tb), out_dtype)
        out_spec = pl.BlockSpec((1, 1, tb), lambda i: (i, 0, 0), memory_space=vmem)
    else:
        w2_arg = jnp.pad(w2, ((0, 0), (0, d_out_pad - D_out))).astype(jnp.bfloat16)
        b2_arg = jnp.pad(b2.reshape(1, D_out),
                         ((0, 0), (0, d_out_pad - D_out))).astype(jnp.float32)
        out_shape = jax.ShapeDtypeStruct((B, d_out_pad), out_dtype)
        out_spec = pl.BlockSpec((tb, d_out_pad), lambda i: (i, 0), memory_space=vmem)

    kernel = _make_mlp_kernel(D_out)

    def _call(single_buffer_weights):
        def const_spec(shape):
            # Grid-invariant block: constant index map keeps it VMEM-resident.
            idx = lambda i: (0,) * len(shape)
            if single_buffer_weights:
                # One buffer instead of two halves its VMEM footprint.
                return pl.BlockSpec(shape, idx, memory_space=vmem,
                                    pipeline_mode=pl.Buffered(1))
            return pl.BlockSpec(shape, idx, memory_space=vmem)

        b2_spec = (pl.BlockSpec(memory_space=smem) if use_vpu_reduce
                   else const_spec(b2_arg.shape))

        return pl.pallas_call(
            kernel,
            out_shape=out_shape,
            grid=(num_tiles,),
            in_specs=[
                # x: tiled along batch, pipelined/double-buffered by Pallas.
                pl.BlockSpec((tb, D_in), lambda i: (i, 0), memory_space=vmem),
                const_spec(w1_arg.shape),
                const_spec(b1_arg.shape),
                const_spec(w2_arg.shape),
                b2_spec,
            ],
            out_specs=out_spec,
            compiler_params=pltpu.CompilerParams(
                dimension_semantics=("parallel",),   # shard batch across v7x TCs
                vmem_limit_bytes=VMEM_LIMIT_BYTES,   # raise default scoped limit
            ),
        )(x_arg, w1_arg, b1_arg, w2_arg, b2_arg)

    try:
        y_raw = _call(single_buffer_weights=True)
    except Exception:
        # pipeline_mode=pl.Buffered(1) not supported by this jax/Mosaic version:
        # fall back to default double-buffering of the (tiny) invariant blocks.
        y_raw = _call(single_buffer_weights=False)

    if use_vpu_reduce:
        return y_raw.reshape(num_tiles * tb, 1)[:B]
    return y_raw[:, :D_out]


def init_params(key, D_in, H1, D_out):
    """torch.nn.Linear-style init: U(-1/sqrt(fan_in), 1/sqrt(fan_in))."""
    k1, k2, k3, k4 = jax.random.split(key, 4)
    bound1 = 1.0 / (D_in ** 0.5)
    bound2 = 1.0 / (H1 ** 0.5)
    w1 = jax.random.uniform(k1, (D_in, H1), jnp.float32, -bound1, bound1)
    b1 = jax.random.uniform(k2, (H1,), jnp.float32, -bound1, bound1)
    w2 = jax.random.uniform(k3, (H1, D_out), jnp.float32, -bound2, bound2)
    b2 = jax.random.uniform(k4, (D_out,), jnp.float32, -bound2, bound2)
    return w1, b1, w2, b2


if __name__ == "__main__":
    # Small shapes consistent with the module: batch=8, D_in=16, H1=32, D_out=1.
    B, D_in, H1, D_out = 8, 16, 32, 1
    key = jax.random.PRNGKey(0)
    kx, kp = jax.random.split(key)
    x = jax.random.normal(kx, (B, D_in), jnp.float32)
    w1, b1, w2, b2 = init_params(kp, D_in, H1, D_out)

    y = two_layer_net(x, w1, b1, w2, b2)
    jax.block_until_ready(y)
    assert y.shape == (B, D_out)

    # Reference applying the same bf16 rounding the kernel uses on the MXU
    # operands (layer-2 / epilogue stay f32 for D_out == 1).
    xb = x.astype(jnp.bfloat16).astype(jnp.float32)
    w1b = w1.astype(jnp.bfloat16).astype(jnp.float32)
    h_ref = jnp.maximum(xb @ w1b + b1, 0.0)
    y_ref = h_ref @ w2 + b2
    assert jnp.allclose(y, y_ref, atol=1e-3, rtol=1e-3)

    # Loose sanity check against the pure-f32 forward of the original module.
    y_f32 = jnp.maximum(x @ w1 + b1, 0.0) @ w2 + b2
    assert jnp.allclose(y, y_f32, atol=5e-2, rtol=5e-2)

    print("KERNEL_OK")
</pallas_src>

<mosaic_0001>
module attributes {stable_mosaic.version = 11 : i64} {
  func.func @mlp_kernel(%arg0: i32, %arg1: memref<8x16xbf16, #tpu.memory_space<vmem>>, %arg2: memref<16x32xbf16, #tpu.memory_space<vmem>>, %arg3: memref<1x32xf32, #tpu.memory_space<vmem>>, %arg4: memref<1x32xf32, #tpu.memory_space<vmem>>, %arg5: memref<1xf32, #tpu.memory_space<smem>>, %arg6: memref<1x1x8xf32, #tpu.memory_space<vmem>>) attributes {dimension_semantics = [#tpu.dimension_semantics<parallel>], iteration_bounds = array<i64: 1>, scalar_prefetch = 0 : i64, scratch_operands = 0 : i64, tpu.core_type = #tpu.core_type<tc>, window_params = [{transform_indices = @transform_0, window_bounds = array<i64: 8, 16>}, {pipeline_mode = #tpu.pipeline_mode<synchronous>, transform_indices = @transform_1, window_bounds = array<i64: 16, 32>}, {pipeline_mode = #tpu.pipeline_mode<synchronous>, transform_indices = @transform_2, window_bounds = array<i64: 1, 32>}, {pipeline_mode = #tpu.pipeline_mode<synchronous>, transform_indices = @transform_3, window_bounds = array<i64: 1, 32>}, {transform_indices = @transform_4, window_bounds = array<i64: 1>}, {transform_indices = @transform_5, window_bounds = array<i64: 1, 1, 8>}]} {
    %c0 = arith.constant 0 : index
    %c0_0 = arith.constant 0 : index
    %0 = vector.load %arg1[%c0, %c0_0] : memref<8x16xbf16, #tpu.memory_space<vmem>>, vector<8x16xbf16>
    %c0_1 = arith.constant 0 : index
    %c0_2 = arith.constant 0 : index
    %1 = vector.load %arg2[%c0_1, %c0_2] : memref<16x32xbf16, #tpu.memory_space<vmem>>, vector<16x32xbf16>
    %cst = arith.constant dense<0.000000e+00> : vector<8x32xf32>
    %2 = tpu.matmul %0, %1, %cst {dimension_numbers = #tpu.dot_dimension_numbers<[1], [0], [0], [1], [0, 0, 1, 1], [], []>} : vector<8x16xbf16>, vector<16x32xbf16>, vector<8x32xf32> -> vector<8x32xf32>
    %c0_3 = arith.constant 0 : index
    %c0_4 = arith.constant 0 : index
    %3 = vector.load %arg3[%c0_3, %c0_4] : memref<1x32xf32, #tpu.memory_space<vmem>>, vector<1x32xf32>
    %4 = vector.broadcast %3 : vector<1x32xf32> to vector<8x32xf32>
    %5 = arith.addf %2, %4 : vector<8x32xf32>
    %cst_5 = arith.constant 0.000000e+00 : f32
    %6 = vector.broadcast %cst_5 : f32 to vector<8x32xf32>
    %7 = arith.maximumf %5, %6 : vector<8x32xf32>
    %c0_6 = arith.constant 0 : index
    %c0_7 = arith.constant 0 : index
    %8 = vector.load %arg4[%c0_6, %c0_7] : memref<1x32xf32, #tpu.memory_space<vmem>>, vector<1x32xf32>
    %9 = vector.broadcast %8 : vector<1x32xf32> to vector<8x32xf32>
    %10 = arith.mulf %7, %9 : vector<8x32xf32>
    %cst_8 = arith.constant dense<0.000000e+00> : vector<8xf32>
    %11 = vector.multi_reduction <add>, %10, %cst_8 [1] : vector<8x32xf32> to vector<8xf32>
    %12 = vector.shape_cast %11 : vector<8xf32> to vector<8x1xf32>
    %13 = tpu.transpose %12, [1, 0] : vector<8x1xf32> -> vector<1x8xf32>
    %c0_9 = arith.constant 0 : index
    %14 = memref.load %arg5[%c0_9] : memref<1xf32, #tpu.memory_space<smem>>
    %15 = vector.broadcast %14 : f32 to vector<1x8xf32>
    %16 = arith.addf %13, %15 : vector<1x8xf32>
    %17 = vector.shape_cast %16 : vector<1x8xf32> to vector<1x1x8xf32>
    %c0_10 = arith.constant 0 : index
    %c0_11 = arith.constant 0 : index
    %c0_12 = arith.constant 0 : index
    %18 = vector.load %arg6[%c0_10, %c0_11, %c0_12] : memref<1x1x8xf32, #tpu.memory_space<vmem>>, vector<1x1x8xf32>
    tpu.vector_store %arg6[%c0_10, %c0_11, %c0_12], %17 {strides = array<i32>} : memref<1x1x8xf32, #tpu.memory_space<vmem>>, vector<1x1x8xf32>,
    return
  }
  func.func @transform_0(%arg0: i32) -> (i32, i32) {
    %c0_i32 = arith.constant 0 : i32
    %c0_i32_0 = arith.constant 0 : i32
    return %arg0, %c0_i32 : i32, i32
  }
  func.func @transform_1(%arg0: i32) -> (i32, i32) {
    %c0_i32 = arith.constant 0 : i32
    %c0_i32_0 = arith.constant 0 : i32
    %c0_i32_1 = arith.constant 0 : i32
    return %c0_i32, %c0_i32_0 : i32, i32
  }
  func.func @transform_2(%arg0: i32) -> (i32, i32) {
    %c0_i32 = arith.constant 0 : i32
    %c0_i32_0 = arith.constant 0 : i32
    %c0_i32_1 = arith.constant 0 : i32
    return %c0_i32, %c0_i32_0 : i32, i32
  }
  func.func @transform_3(%arg0: i32) -> (i32, i32) {
    %c0_i32 = arith.constant 0 : i32
    %c0_i32_0 = arith.constant 0 : i32
    %c0_i32_1 = arith.constant 0 : i32
    return %c0_i32, %c0_i32_0 : i32, i32
  }
  func.func @transform_4(%arg0: i32) -> i32 {
    %c0_i32 = arith.constant 0 : i32
    %c0_i32_0 = arith.constant 0 : i32
    return %c0_i32 : i32
  }
  func.func @transform_5(%arg0: i32) -> (i32, i32, i32) {
    %c0_i32 = arith.constant 0 : i32
    %c0_i32_0 = arith.constant 0 : i32
    %c0_i32_1 = arith.constant 0 : i32
    return %arg0, %c0_i32, %c0_i32_0 : i32, i32, i32
  }
}

module attributes {stable_mosaic.version = 11 : i64} {
  func.func @mlp_kernel(%arg0: i32, %arg1: memref<8x16xbf16, #tpu.memory_space<vmem>>, %arg2: memref<16x32xbf16, #tpu.memory_space<vmem>>, %arg3: memref<1x32xf32, #tpu.memory_space<vmem>>, %arg4: memref<1x32xf32, #tpu.memory_space<vmem>>, %arg5: memref<1xf32, #tpu.memory_space<smem>>, %arg6: memref<1x1x8xf32, #tpu.memory_space<vmem>>) attributes {dimension_semantics = [#tpu.dimension_semantics<parallel>], iteration_bounds = array<i64: 1>, scalar_prefetch = 0 : i64, scratch_operands = 0 : i64, tpu.core_type = #tpu.core_type<tc>, window_params = [{transform_indices = @transform_0, window_bounds = array<i64: 8, 16>}, {pipeline_mode = #tpu.pipeline_mode<synchronous>, transform_indices = @transform_1, window_bounds = array<i64: 16, 32>}, {pipeline_mode = #tpu.pipeline_mode<synchronous>, transform_indices = @transform_2, window_bounds = array<i64: 1, 32>}, {pipeline_mode = #tpu.pipeline_mode<synchronous>, transform_indices = @transform_3, window_bounds = array<i64: 1, 32>}, {transform_indices = @transform_4, window_bounds = array<i64: 1>}, {transform_indices = @transform_5, window_bounds = array<i64: 1, 1, 8>}]} {
    %c0 = arith.constant 0 : index
    %c0_0 = arith.constant 0 : index
    %0 = vector.load %arg1[%c0, %c0_0] : memref<8x16xbf16, #tpu.memory_space<vmem>>, vector<8x16xbf16>
    %c0_1 = arith.constant 0 : index
    %c0_2 = arith.constant 0 : index
    %1 = vector.load %arg2[%c0_1, %c0_2] : memref<16x32xbf16, #tpu.memory_space<vmem>>, vector<16x32xbf16>
    %cst = arith.constant dense<0.000000e+00> : vector<8x32xf32>
    %2 = tpu.matmul %0, %1, %cst {dimension_numbers = #tpu.dot_dimension_numbers<[1], [0], [0], [1], [0, 0, 1, 1], [], []>} : vector<8x16xbf16>, vector<16x32xbf16>, vector<8x32xf32> -> vector<8x32xf32>
    %c0_3 = arith.constant 0 : index
    %c0_4 = arith.constant 0 : index
    %3 = vector.load %arg3[%c0_3, %c0_4] : memref<1x32xf32, #tpu.memory_space<vmem>>, vector<1x32xf32>
    %4 = vector.broadcast %3 : vector<1x32xf32> to vector<8x32xf32>
    %5 = arith.addf %2, %4 : vector<8x32xf32>
    %cst_5 = arith.constant 0.000000e+00 : f32
    %6 = vector.broadcast %cst_5 : f32 to vector<8x32xf32>
    %7 = arith.maximumf %5, %6 : vector<8x32xf32>
    %c0_6 = arith.constant 0 : index
    %c0_7 = arith.constant 0 : index
    %8 = vector.load %arg4[%c0_6, %c0_7] : memref<1x32xf32, #tpu.memory_space<vmem>>, vector<1x32xf32>
    %9 = vector.broadcast %8 : vector<1x32xf32> to vector<8x32xf32>
    %10 = arith.mulf %7, %9 : vector<8x32xf32>
    %cst_8 = arith.constant dense<0.000000e+00> : vector<8xf32>
    %11 = vector.multi_reduction <add>, %10, %cst_8 [1] : vector<8x32xf32> to vector<8xf32>
    %12 = vector.shape_cast %11 : vector<8xf32> to vector<8x1xf32>
    %13 = tpu.transpose %12, [1, 0] : vector<8x1xf32> -> vector<1x8xf32>
    %c0_9 = arith.constant 0 : index
    %14 = memref.load %arg5[%c0_9] : memref<1xf32, #tpu.memory_space<smem>>
    %15 = vector.broadcast %14 : f32 to vector<1x8xf32>
    %16 = arith.addf %13, %15 : vector<1x8xf32>
    %17 = vector.shape_cast %16 : vector<1x8xf32> to vector<1x1x8xf32>
    %c0_10 = arith.constant 0 : index
    %c0_11 = arith.constant 0 : index
    %c0_12 = arith.constant 0 : index
    %18 = vector.load %arg6[%c0_10, %c0_11, %c0_12] : memref<1x1x8xf32, #tpu.memory_space<vmem>>, vector<1x1x8xf32>
    tpu.vector_store %arg6[%c0_10, %c0_11, %c0_12], %17 {strides = array<i32>} : memref<1x1x8xf32, #tpu.memory_space<vmem>>, vector<1x1x8xf32>,
    return
  }
  func.func @transform_0(%arg0: i32) -> (i32, i32) {
    %c0_i32 = arith.constant 0 : i32
    %c0_i32_0 = arith.constant 0 : i32
    return %arg0, %c0_i32 : i32, i32
  }
  func.func @transform_1(%arg0: i32) -> (i32, i32) {
    %c0_i32 = arith.constant 0 : i32
    %c0_i32_0 = arith.constant 0 : i32
    %c0_i32_1 = arith.constant 0 : i32
    return %c0_i32, %c0_i32_0 : i32, i32
  }
  func.func @transform_2(%arg0: i32) -> (i32, i32) {
    %c0_i32 = arith.constant 0 : i32
    %c0_i32_0 = arith.constant 0 : i32
    %c0_i32_1 = arith.constant 0 : i32
    return %c0_i32, %c0_i32_0 : i32, i32
  }
  func.func @transform_3(%arg0: i32) -> (i32, i32) {
    %c0_i32 = arith.constant 0 : i32
    %c0_i32_0 = arith.constant 0 : i32
    %c0_i32_1 = arith.constant 0 : i32
    return %c0_i32, %c0_i32_0 : i32, i32
  }
  func.func @transform_4(%arg0: i32) -> i32 {
    %c0_i32 = arith.constant 0 : i32
    %c0_i32_0 = arith.constant 0 : i32
    return %c0_i32 : i32
  }
  func.func @transform_5(%arg0: i32) -> (i32, i32, i32) {
    %c0_i32 = arith.constant 0 : i32
    %c0_i32_0 = arith.constant 0 : i32
    %c0_i32_1 = arith.constant 0 : i32
    return %arg0, %c0_i32, %c0_i32_0 : i32, i32, i32
  }
}

</mosaic_0001>

<bundles_post_ra>
// kernel: tpu_custom_call.1
= control target key start
LH: loop header
LB: loop body
LE: loop exit
PB: predicated region body
PF: predicated region fallthrough
CT: control target
= control target key end

     0   :  { %11 = vsyncpa [#allocation4], 0  ;;  %s316_s0 = inlined_call_operand.hbm [shape: bf16[8,16], index: 0, kind: input, shape index: {}]   ;;  %s317_s1 = inlined_call_operand.hbm [shape: bf16[16,32], index: 1, kind: input, shape index: {}]   ;;  %s318_s2 = inlined_call_operand.vmem [shape: f32[1,32], index: 2, kind: input, shape index: {}]   ;;  %s319_s3 = inlined_call_operand.vmem [shape: f32[1,32], index: 3, kind: input, shape index: {}]   ;;  %s320_s4 = inlined_call_operand.<no memory space> [shape: f32[1], index: 4, kind: input, shape index: {}]   ;;  %s321_s5 = inlined_call_operand.hbm [shape: f32[1,1,8], index: 5, kind: output, shape index: {}]  }
   0x1   :  { %12 = vsyncpa [#allocation7], 0 }
   0x2   :  { %13 = vsyncpa [#allocation5], 0  ;;  %s261_s18 = smov [#allocation3]   ;;  %s262_s20 = smov [#allocation6]  }
   0x3   :  { %s20_s19 = sshll.u32 %s261_s18, 4  ;;  %s29_s21 = sshll.u32 %s262_s20, 4  ;;  %s21_s19 = int_to_ptr.vmem [resolvable:$true] %s20_s19  ;;  %s30_s21 = int_to_ptr.vmem [resolvable:$true] %s29_s21 }
   0x4   :  { %s203_s22 = scalar_lea.vmem %s21_s19, 64  ;;  %p208_p1 = scmp.lt.s32.totalorder %s21_s19, %s21_s19 }
   0x5   :  { %p204_p0 = scmp.ne.s32.totalorder %s21_s19, %s203_s22  ;;  %p209_p2 = scmp.lt.s32.totalorder %s203_s22, %s203_s22 }
   0x7   :  { %p210_p3 = por %p209_p2, %p208_p1 }
   0x9   :  { %p211_p4 = pnand %p210_p3, %p204_p0 }
   0xb   :  { %214 = shalt.err (!%p211_p4)
}
   0xc   :  { %23 = dma.hbm_to_vmem [thread:$0]  %s316_s0, 64, %s21_s19, [#allocation4]  }
   0xd   :  { %s223_s25 = scalar_lea.vmem %s30_s21, 128  ;;  %p228_p6 = scmp.lt.s32.totalorder %s30_s21, %s30_s21 }
   0xe   :  { %p224_p5 = scmp.ne.s32.totalorder %s30_s21, %s223_s25  ;;  %p229_p7 = scmp.lt.s32.totalorder %s223_s25, %s223_s25 }
  0x10   :  { %p230_p8 = por %p229_p7, %p228_p6 }
  0x12   :  { %p231_p9 = pnand %p230_p8, %p224_p5 }
  0x14   :  { %234 = shalt.err (!%p231_p9)
}
  0x15   :  { %s263_s26 = smov 64   ;;  %s264_s27 = smov 4  }
  0x16   :  { %35 = dma.hbm_to_vmem [thread:$0]  %s317_s1, 128, %s30_s21, [#allocation7], %s263_s26, %s263_s26, %s264_s27  }
  0x17   :  { %255 = dma.done.wait [#allocation4], 64  }
  0x18   :  { %256 = vsyncadd [#allocation4], 4294967232 }
  0x19   :  { %257 = dma.done.wait [#allocation7], 128  }
  0x1a   :  { %258 = vsyncadd [#allocation7], 4294967168  ;;  %v265_v0 = vmov 0.0   ;;  %vm266_vm0 = vmmov 0   ;;  %v194_v1 = vld [vmem:[#allocation6] sm:$0xff]   ;;  %vm65_vm1 = vcmask 130048   ;;  %v155_v14 = vstv %s320_s4 }
  0x1b   :  { %181 = vmatprep.subr.bf16.mxu0 %v265_v0  ;;  %183 = vmatprep.mubr.msk.bf16.mxu0 %vm266_vm0, %v265_v0  ;;  %v49_v2 = vld [vmem:[#allocation3] sm:$0xf]  ;;  %vm118_vm2 = vcmask 261120   ;;  %vm157_vm3 = vcmask 57344  }
  0x1c   :  { %182 = vmatpush3.bf16.msra.mxu0 %v194_v1  ;;  %v175_v3 = vld [vmem:[%s318_s2] ss:$0 sm:$0xff]  ;;  %s267_s2 = smov [#allocation8]  }
  0x1d   :  { %v178_v7 = vld [vmem:[%s319_s3] ss:$0 sm:$0xff]  ;;  %s165_s9 = sshll.u32 %s267_s2, 4  ;;  %s166_s9 = int_to_ptr.vmem [resolvable:$true] %s165_s9 }
  0x1e   :  { %s235_s3 = scalar_lea.vmem %s166_s9, 16  ;;  %s239_s10 = scalar_lea.vmem %s166_s9, 32 }
  0x1f   :  { %184 = vmatmul.mubr.msk.bf16.vlgmr.msra.gmra.mxu0 %vm65_vm1, %v49_v2  ;;  %p236_p10 = scmp.ne.s32.totalorder %s166_s9, %s235_s3  ;;  %p240_p11 = scmp.lt.s32.totalorder %s166_s9, %s166_s9 }
  0x20   :  { %p241_p12 = scmp.lt.s32.totalorder %s239_s10, %s235_s3 }
  0x22   :  { %p242_p13 = por %p241_p12, %p240_p11 }
  0x24   :  { %p243_p0 = pnand %p242_p13, %p236_p10 }
  0xdf   :  { %v103_v4 = vpop.f32.mrf.mxu0 }
  0xe0   :  { %v104_v5 = vadd.f32 %v175_v3, %v103_v4 }
  0xe1   :  { %v185_v6 = vpop.f32.mrf.mxu0 }
  0xe2   :  { %v109_v8 = vmax.f32 %v104_v5, 0.0 }
  0xe3   :  { %v106_v9 = vpop.f32.mrf.mxu0 }
  0xe4   :  { %v117_v10 = vmul.f32 %v178_v7, %v109_v8 }
  0xe5   :  { %v186_v11 = vpop.f32.mrf.mxu0 }
  0xe6   :  { %v119_v12 = vsel %vm118_vm2, %v117_v10, 0.0 }
  0xe7   :  { %120 = vadd.xlane.f32.xlu0 %v119_v12 }
 0x170   :  { %v121_v13 = vpop.xlane.xlu0 %120 }
 0x171   :  { %122 = vxpose.xlu0.b32.start.end [1/1] (short) (narrow) %v121_v13, 8 }
 0x1ed   :  { %v138_v15 = vpop.trf.xlu0 }
 0x1ee   :  { %v156_v16 = vadd.f32 %v155_v14, %v138_v15 }
 0x1f0   :  { %158 = vst.msk [vmem:[#allocation8] sm:$0x1] %vm157_vm3, %v156_v16 }
 0x1f1   :  { %246 = shalt.err (!%p243_p0)
}
 0x1f2   :  { %168 = dma.vmem_to_hbm [thread:$0]  %s166_s9, 16, %s321_s5, [#allocation5]  }
 0x1f3   :  { %259 = dma.done.wait [#allocation5], 16  }
 0x1f4   :  { %260 = vsyncadd [#allocation5], 4294967280 }
 0x1f5   :  { %172 = vsyncpa [#allocation4], 1 }
 0x1f6   :  { %173 = vsyncpa [#allocation7], 1 }
 0x1f7   :  { %174 = vsyncpa [#allocation5], 1 }

// kernel: tpu_custom_call.1
= control target key start
LH: loop header
LB: loop body
LE: loop exit
PB: predicated region body
PF: predicated region fallthrough
CT: control target
= control target key end

     0   :  { %11 = vsyncpa [#allocation4], 0  ;;  %s316_s0 = inlined_call_operand.hbm [shape: bf16[8,16], index: 0, kind: input, shape index: {}]   ;;  %s317_s1 = inlined_call_operand.hbm [shape: bf16[16,32], index: 1, kind: input, shape index: {}]   ;;  %s318_s2 = inlined_call_operand.vmem [shape: f32[1,32], index: 2, kind: input, shape index: {}]   ;;  %s319_s3 = inlined_call_operand.vmem [shape: f32[1,32], index: 3, kind: input, shape index: {}]   ;;  %s320_s4 = inlined_call_operand.<no memory space> [shape: f32[1], index: 4, kind: input, shape index: {}]   ;;  %s321_s5 = inlined_call_operand.hbm [shape: f32[1,1,8], index: 5, kind: output, shape index: {}]  }
   0x1   :  { %12 = vsyncpa [#allocation7], 0 }
   0x2   :  { %13 = vsyncpa [#allocation5], 0  ;;  %s261_s18 = smov [#allocation3]   ;;  %s262_s20 = smov [#allocation6]  }
   0x3   :  { %s20_s19 = sshll.u32 %s261_s18, 4  ;;  %s29_s21 = sshll.u32 %s262_s20, 4  ;;  %s21_s19 = int_to_ptr.vmem [resolvable:$true] %s20_s19  ;;  %s30_s21 = int_to_ptr.vmem [resolvable:$true] %s29_s21 }
   0x4   :  { %s203_s22 = scalar_lea.vmem %s21_s19, 64  ;;  %p208_p1 = scmp.lt.s32.totalorder %s21_s19, %s21_s19 }
   0x5   :  { %p204_p0 = scmp.ne.s32.totalorder %s21_s19, %s203_s22  ;;  %p209_p2 = scmp.lt.s32.totalorder %s203_s22, %s203_s22 }
   0x7   :  { %p210_p3 = por %p209_p2, %p208_p1 }
   0x9   :  { %p211_p4 = pnand %p210_p3, %p204_p0 }
   0xb   :  { %214 = shalt.err (!%p211_p4)
}
   0xc   :  { %23 = dma.hbm_to_vmem [thread:$0]  %s316_s0, 64, %s21_s19, [#allocation4]  }
   0xd   :  { %s223_s25 = scalar_lea.vmem %s30_s21, 128  ;;  %p228_p6 = scmp.lt.s32.totalorder %s30_s21, %s30_s21 }
   0xe   :  { %p224_p5 = scmp.ne.s32.totalorder %s30_s21, %s223_s25  ;;  %p229_p7 = scmp.lt.s32.totalorder %s223_s25, %s223_s25 }
  0x10   :  { %p230_p8 = por %p229_p7, %p228_p6 }
  0x12   :  { %p231_p9 = pnand %p230_p8, %p224_p5 }
  0x14   :  { %234 = shalt.err (!%p231_p9)
}
  0x15   :  { %s263_s26 = smov 64   ;;  %s264_s27 = smov 4  }
  0x16   :  { %35 = dma.hbm_to_vmem [thread:$0]  %s317_s1, 128, %s30_s21, [#allocation7], %s263_s26, %s263_s26, %s264_s27  }
  0x17   :  { %255 = dma.done.wait [#allocation4], 64  }
  0x18   :  { %256 = vsyncadd [#allocation4], 4294967232 }
  0x19   :  { %257 = dma.done.wait [#allocation7], 128  }
  0x1a   :  { %258 = vsyncadd [#allocation7], 4294967168  ;;  %v265_v0 = vmov 0.0   ;;  %vm266_vm0 = vmmov 0   ;;  %v194_v1 = vld [vmem:[#allocation6] sm:$0xff]   ;;  %vm65_vm1 = vcmask 130048   ;;  %v155_v14 = vstv %s320_s4 }
  0x1b   :  { %181 = vmatprep.subr.bf16.mxu0 %v265_v0  ;;  %183 = vmatprep.mubr.msk.bf16.mxu0 %vm266_vm0, %v265_v0  ;;  %v49_v2 = vld [vmem:[#allocation3] sm:$0xf]  ;;  %vm118_vm2 = vcmask 261120   ;;  %vm157_vm3 = vcmask 57344  }
  0x1c   :  { %182 = vmatpush3.bf16.msra.mxu0 %v194_v1  ;;  %v175_v3 = vld [vmem:[%s318_s2] ss:$0 sm:$0xff]  ;;  %s267_s2 = smov [#allocation8]  }
  0x1d   :  { %v178_v7 = vld [vmem:[%s319_s3] ss:$0 sm:$0xff]  ;;  %s165_s9 = sshll.u32 %s267_s2, 4  ;;  %s166_s9 = int_to_ptr.vmem [resolvable:$true] %s165_s9 }
  0x1e   :  { %s235_s3 = scalar_lea.vmem %s166_s9, 16  ;;  %s239_s10 = scalar_lea.vmem %s166_s9, 32 }
  0x1f   :  { %184 = vmatmul.mubr.msk.bf16.vlgmr.msra.gmra.mxu0 %vm65_vm1, %v49_v2  ;;  %p236_p10 = scmp.ne.s32.totalorder %s166_s9, %s235_s3  ;;  %p240_p11 = scmp.lt.s32.totalorder %s166_s9, %s166_s9 }
  0x20   :  { %p241_p12 = scmp.lt.s32.totalorder %s239_s10, %s235_s3 }
  0x22   :  { %p242_p13 = por %p241_p12, %p240_p11 }
  0x24   :  { %p243_p0 = pnand %p242_p13, %p236_p10 }
  0xdf   :  { %v103_v4 = vpop.f32.mrf.mxu0 }
  0xe0   :  { %v104_v5 = vadd.f32 %v175_v3, %v103_v4 }
  0xe1   :  { %v185_v6 = vpop.f32.mrf.mxu0 }
  0xe2   :  { %v109_v8 = vmax.f32 %v104_v5, 0.0 }
  0xe3   :  { %v106_v9 = vpop.f32.mrf.mxu0 }
  0xe4   :  { %v117_v10 = vmul.f32 %v178_v7, %v109_v8 }
  0xe5   :  { %v186_v11 = vpop.f32.mrf.mxu0 }
  0xe6   :  { %v119_v12 = vsel %vm118_vm2, %v117_v10, 0.0 }
  0xe7   :  { %120 = vadd.xlane.f32.xlu0 %v119_v12 }
 0x170   :  { %v121_v13 = vpop.xlane.xlu0 %120 }
 0x171   :  { %122 = vxpose.xlu0.b32.start.end [1/1] (short) (narrow) %v121_v13, 8 }
 0x1ed   :  { %v138_v15 = vpop.trf.xlu0 }
 0x1ee   :  { %v156_v16 = vadd.f32 %v155_v14, %v138_v15 }
 0x1f0   :  { %158 = vst.msk [vmem:[#allocation8] sm:$0x1] %vm157_vm3, %v156_v16 }
 0x1f1   :  { %246 = shalt.err (!%p243_p0)
}
 0x1f2   :  { %168 = dma.vmem_to_hbm [thread:$0]  %s166_s9, 16, %s321_s5, [#allocation5]  }
 0x1f3   :  { %259 = dma.done.wait [#allocation5], 16  }
 0x1f4   :  { %260 = vsyncadd [#allocation5], 4294967280 }
 0x1f5   :  { %172 = vsyncpa [#allocation4], 1 }
 0x1f6   :  { %173 = vsyncpa [#allocation7], 1 }
 0x1f7   :  { %174 = vsyncpa [#allocation5], 1 }

</bundles_post_ra>
